<compile_context>
chip_gen: v6e
topology: v6e:2x2x1
jax: 0.10.0
libtpu: 0.0.40
codegen_flags: <defaults>
</compile_context>

<pallas_src>
import jax
import jax.numpy as jnp
from jax.experimental import pallas as pl
from jax.experimental.pallas import tpu as pltpu

_LANE = 128
_SUBLANE = 8


def _round_up(x, m):
    return (x + m - 1) // m * m


def _physical_vmem_bytes():
    """Per-core physical VMEM (128 MiB v5e/v6e, 64 MiB v7x); conservative fallback."""
    try:
        info = pltpu.get_tpu_info()
        for attr in ("vmem_capacity_bytes", "vmem_bytes", "vmem_size_bytes"):
            v = getattr(info, attr, None)
            if v:
                return int(v)
    except Exception:
        pass
    return 64 * 1024 * 1024  # safe on every generation


def _vector_norm_kernel(x_ref, w_ref, b_ref, o_ref):
    # x_ref: [tB, C, HW]  streamed feature-map tile (native dtype)
    # w_ref: [C, NCP]     folded fc weight  W.T * (temp * vector), resident, f32
    # b_ref: [1, NCP]     folded fc bias    fc_b * vector,         resident, f32
    # o_ref: [tB, NCP]    scaled logits tile
    hw = x_ref.shape[-1]

    # adaptive_avg_pool2d(..., [1,1]) == spatial mean.  Two-stage reduction:
    # VPU-accumulate lane tiles (widening to f32 here, not in the wrapper), then a
    # single cross-lane (XLU) sum per (b, c) row.
    if hw % _LANE == 0 and hw > _LANE:
        acc = x_ref[:, :, 0:_LANE].astype(jnp.float32)
        for k in range(1, hw // _LANE):
            acc = acc + x_ref[:, :, k * _LANE:(k + 1) * _LANE].astype(jnp.float32)
    else:
        acc = x_ref[...].astype(jnp.float32)
    feats = jnp.sum(acc, axis=-1) * (1.0 / hw)               # [tB, C]

    # Per-row L1-norm / channel-max scale.  norm_temperature and the per-class
    # vector are already folded into w_ref / b_ref, so only norm / f_max remains.
    # Exact divide (the reciprocal acts on a [tB, 1] tensor -> approx buys nothing).
    # No guard on f_max == 0, matching the PyTorch reference.
    norm = jnp.sum(jnp.abs(feats), axis=1, keepdims=True)    # [tB, 1]
    f_max = jnp.max(feats, axis=1, keepdims=True)            # [tB, 1]
    scaled = feats * (norm / f_max)                          # [tB, C]

    # fc (+ folded temperature and per-class vector): lane-dense N on the MXU.
    o_ref[...] = (jnp.dot(scaled, w_ref[...],
                          preferred_element_type=jnp.float32)
                  + b_ref[...]).astype(o_ref.dtype)


def vector_norm_evaluate(x_nchw, fc_w, fc_b, vector, norm_temperature,
                         *, block_b=None):
    """x_nchw: [B, ndim, H, W] feature map (NCHW), any float dtype.
       fc_w: [num_classes, ndim] (torch Linear convention), fc_b: [num_classes],
       vector: [num_classes], norm_temperature: [1]."""
    B, C, H, W = x_nchw.shape
    HW = H * W
    num_classes = fc_w.shape[0]
    ncp = _round_up(num_classes, _LANE)            # lane-dense output / MXU N dim

    # Stream x in its native dtype (no f32 cast / no pad copy in the wrapper).
    x = x_nchw.reshape(B, C, HW)
    x_itemsize = jnp.dtype(x.dtype).itemsize

    # ---- generation-aware VMEM sizing --------------------------------------
    physical_vmem = _physical_vmem_bytes()
    x_row_bytes = C * HW * x_itemsize
    out_row_bytes = ncp * 4
    resident_bytes = (C * ncp + _SUBLANE * ncp) * 4        # folded weight + bias

    if block_b is None:
        per_buffer_budget = physical_vmem // 6             # ~21 MiB v5e/v6e, ~10 MiB v7x
        block_b = per_buffer_budget // (x_row_bytes + out_row_bytes)
        block_b = (block_b // _SUBLANE) * _SUBLANE
    block_b = max(_SUBLANE, _round_up(block_b, _SUBLANE))
    # Keep >= 2 grid steps: lets the "parallel" batch axis shard across v7x's
    # two TensorCores and gives the DMA pipeline something to overlap.
    block_b = min(block_b, max(_SUBLANE, _round_up(pl.cdiv(B, 2), _SUBLANE)))

    grid = (pl.cdiv(B, block_b),)

    # vmem_limit sized from the actual double-buffered footprint (+ headroom),
    # capped at 3/4 of physical VMEM (48 MiB on v7x, 96 MiB on v5e/v6e).
    footprint = 2 * block_b * (x_row_bytes + out_row_bytes) + resident_bytes
    vmem_limit = int(min(physical_vmem * 3 // 4,
                         max(footprint + (8 << 20), 32 << 20)))

    # ---- fold temperature / per-class vector into fc weight & bias ---------
    temp = jnp.asarray(norm_temperature, jnp.float32).reshape(())
    vec = jnp.asarray(vector, jnp.float32)
    w_folded = jnp.zeros((C, ncp), jnp.float32).at[:, :num_classes].set(
        jnp.transpose(fc_w).astype(jnp.float32) * (temp * vec)[None, :])
    b_folded = jnp.zeros((1, ncp), jnp.float32).at[:, :num_classes].set(
        (fc_b.astype(jnp.float32) * vec)[None, :])

    out = pl.pallas_call(
        _vector_norm_kernel,
        out_shape=jax.ShapeDtypeStruct((B, ncp), jnp.float32),
        grid_spec=pltpu.PrefetchScalarGridSpec(
            num_scalar_prefetch=0,
            grid=grid,
            in_specs=[
                pl.BlockSpec((block_b, C, HW), lambda i: (i, 0, 0)),  # streamed x
                pl.BlockSpec((C, ncp), lambda i: (0, 0)),             # resident folded W
                pl.BlockSpec((1, ncp), lambda i: (0, 0)),             # resident folded b
            ],
            out_specs=pl.BlockSpec((block_b, ncp), lambda i: (i, 0)),
        ),
        compiler_params=pltpu.CompilerParams(
            dimension_semantics=("parallel",),
            vmem_limit_bytes=vmem_limit,
        ),
    )(x, w_folded, b_folded)

    return out[:, :num_classes]


def _reference(x_nchw, fc_w, fc_b, vector, norm_temperature):
    B, C, H, W = x_nchw.shape
    feats = jnp.mean(x_nchw.reshape(B, C, H * W).astype(jnp.float32), axis=-1)
    norm = jnp.sum(jnp.abs(feats), axis=1, keepdims=True)
    f_max = jnp.max(feats, axis=1, keepdims=True)
    feats = feats * norm_temperature[0] * (norm / f_max)
    logits = feats @ fc_w.T + fc_b
    return logits * vector[None, :]


if __name__ == "__main__":
    B, ndim, H, W = 16, 32, 16, 16
    num_classes = 10

    key = jax.random.PRNGKey(0)
    k_x, k_w, k_b = jax.random.split(key, 3)

    # Synthetic feature map produced by model.forward_features (identity backbone).
    x = jax.random.normal(k_x, (B, ndim, H, W), dtype=jnp.float32)

    # model.fc: Linear(ndim, num_classes) -- deterministic init.
    fc_w = jax.random.normal(k_w, (num_classes, ndim), dtype=jnp.float32) * 0.05
    fc_b = jax.random.normal(k_b, (num_classes,), dtype=jnp.float32) * 0.01

    # Module parameters exactly as in __init__.
    vector = jnp.ones((num_classes,), dtype=jnp.float32) * 1.5
    norm_temperature = jnp.ones((1,), dtype=jnp.float32) * 1.5

    # Default sizing caps block_b at ceil(B/2) rounded to 8 -> grid=(2,): exercises
    # the batch-tiled, pipelined, two-TensorCore-shardable path.
    out = vector_norm_evaluate(x, fc_w, fc_b, vector, norm_temperature)
    out = jax.block_until_ready(out)

    ref = _reference(x, fc_w, fc_b, vector, norm_temperature)
    assert out.shape == (B, num_classes)
    # Exact division inside the kernel -> tight tolerance.
    assert jnp.allclose(out, ref, rtol=1e-4, atol=1e-4), (out, ref)

    print("KERNEL_OK")
</pallas_src>

<mosaic_0001>
module attributes {stable_mosaic.version = 11 : i64} {
  func.func @_vector_norm_kernel(%arg0: i32, %arg1: memref<8x32x256xf32, #tpu.memory_space<vmem>>, %arg2: memref<32x128xf32, #tpu.memory_space<vmem>>, %arg3: memref<1x128xf32, #tpu.memory_space<vmem>>, %arg4: memref<8x128xf32, #tpu.memory_space<vmem>>) attributes {dimension_semantics = [#tpu.dimension_semantics<parallel>], iteration_bounds = array<i64: 2>, scalar_prefetch = 0 : i64, scratch_operands = 0 : i64, tpu.core_type = #tpu.core_type<tc>, window_params = [{transform_indices = @transform_0, window_bounds = array<i64: 8, 32, 256>}, {pipeline_mode = #tpu.pipeline_mode<synchronous>, transform_indices = @transform_1, window_bounds = array<i64: 32, 128>}, {pipeline_mode = #tpu.pipeline_mode<synchronous>, transform_indices = @transform_2, window_bounds = array<i64: 1, 128>}, {transform_indices = @transform_3, window_bounds = array<i64: 8, 128>}]} {
    %c0 = arith.constant 0 : index
    %c0_0 = arith.constant 0 : index
    %c0_1 = arith.constant 0 : index
    %0 = vector.load %arg1[%c0, %c0_0, %c0_1] : memref<8x32x256xf32, #tpu.memory_space<vmem>>, vector<8x32x128xf32>
    %c0_2 = arith.constant 0 : index
    %c0_3 = arith.constant 0 : index
    %c128 = arith.constant 128 : index
    %1 = vector.load %arg1[%c0_2, %c0_3, %c128] : memref<8x32x256xf32, #tpu.memory_space<vmem>>, vector<8x32x128xf32>
    %2 = arith.addf %0, %1 : vector<8x32x128xf32>
    %cst = arith.constant dense<0.000000e+00> : vector<8x32xf32>
    %3 = vector.multi_reduction <add>, %2, %cst [2] : vector<8x32x128xf32> to vector<8x32xf32>
    %cst_4 = arith.constant 3.906250e-03 : f32
    %4 = vector.broadcast %cst_4 : f32 to vector<8x32xf32>
    %5 = arith.mulf %3, %4 : vector<8x32xf32>
    %6 = math.absf %5 : vector<8x32xf32>
    %cst_5 = arith.constant dense<0.000000e+00> : vector<8xf32>
    %7 = vector.multi_reduction <add>, %6, %cst_5 [1] : vector<8x32xf32> to vector<8xf32>
    %8 = vector.shape_cast %7 : vector<8xf32> to vector<8x1xf32>
    %cst_6 = arith.constant dense<0xFF800000> : vector<8xf32>
    %9 = vector.multi_reduction <maximumf>, %5, %cst_6 [1] : vector<8x32xf32> to vector<8xf32>
    %10 = vector.shape_cast %9 : vector<8xf32> to vector<8x1xf32>
    %11 = arith.divf %8, %10 : vector<8x1xf32>
    %12 = vector.broadcast %11 : vector<8x1xf32> to vector<8x32xf32>
    %13 = arith.mulf %5, %12 : vector<8x32xf32>
    %c0_7 = arith.constant 0 : index
    %c0_8 = arith.constant 0 : index
    %14 = vector.load %arg2[%c0_7, %c0_8] : memref<32x128xf32, #tpu.memory_space<vmem>>, vector<32x128xf32>
    %cst_9 = arith.constant dense<0.000000e+00> : vector<8x128xf32>
    %15 = tpu.matmul %13, %14, %cst_9 {dimension_numbers = #tpu.dot_dimension_numbers<[1], [0], [0], [1], [0, 0, 1, 1], [], []>} : vector<8x32xf32>, vector<32x128xf32>, vector<8x128xf32> -> vector<8x128xf32>
    %c0_10 = arith.constant 0 : index
    %c0_11 = arith.constant 0 : index
    %16 = vector.load %arg3[%c0_10, %c0_11] : memref<1x128xf32, #tpu.memory_space<vmem>>, vector<1x128xf32>
    %17 = vector.broadcast %16 : vector<1x128xf32> to vector<8x128xf32>
    %18 = arith.addf %15, %17 : vector<8x128xf32>
    %c0_12 = arith.constant 0 : index
    %c0_13 = arith.constant 0 : index
    %19 = vector.load %arg4[%c0_12, %c0_13] : memref<8x128xf32, #tpu.memory_space<vmem>>, vector<8x128xf32>
    tpu.vector_store %arg4[%c0_12, %c0_13], %18 {strides = array<i32>} : memref<8x128xf32, #tpu.memory_space<vmem>>, vector<8x128xf32>,
    return
  }
  func.func @transform_0(%arg0: i32) -> (i32, i32, i32) {
    %c0_i32 = arith.constant 0 : i32
    %c0_i32_0 = arith.constant 0 : i32
    %c0_i32_1 = arith.constant 0 : i32
    return %arg0, %c0_i32, %c0_i32_0 : i32, i32, i32
  }
  func.func @transform_1(%arg0: i32) -> (i32, i32) {
    %c0_i32 = arith.constant 0 : i32
    %c0_i32_0 = arith.constant 0 : i32
    %c0_i32_1 = arith.constant 0 : i32
    return %c0_i32, %c0_i32_0 : i32, i32
  }
  func.func @transform_2(%arg0: i32) -> (i32, i32) {
    %c0_i32 = arith.constant 0 : i32
    %c0_i32_0 = arith.constant 0 : i32
    %c0_i32_1 = arith.constant 0 : i32
    return %c0_i32, %c0_i32_0 : i32, i32
  }
  func.func @transform_3(%arg0: i32) -> (i32, i32) {
    %c0_i32 = arith.constant 0 : i32
    %c0_i32_0 = arith.constant 0 : i32
    return %arg0, %c0_i32 : i32, i32
  }
}

</mosaic_0001>

<bundles_post_ra>
// kernel: tpu_custom_call.1
= control target key start
LH: loop header
LB: loop body
LE: loop exit
PB: predicated region body
PF: predicated region fallthrough
CT: control target
= control target key end

     0   :  { %8 = vsyncpa [#allocation3], 0  ;;  %s2253_s0 = inlined_call_operand.hbm [shape: f32[16,32,256], index: 0, kind: input, shape index: {}]   ;;  %s2254_s1 = inlined_call_operand.hbm [shape: f32[32,128], index: 1, kind: input, shape index: {}]   ;;  %s2255_s2 = inlined_call_operand.vmem [shape: f32[1,128], index: 2, kind: input, shape index: {}]   ;;  %s2256_s3 = inlined_call_operand.hbm [shape: f32[16,128], index: 3, kind: output, shape index: {}]  }
   0x1   :  { %10 = vsyncpa [#allocation3 + $0x1], 0 }
   0x2   :  { %11 = vsyncpa [#allocation6], 0 }
   0x3   :  { %12 = vsyncpa [#allocation4], 0 }
   0x4   :  { %14 = vsyncpa [#allocation4 + $0x1], 0  ;;  %s1634_s12 = smov 0   ;;  %s1636_s13 = smov 0  }
   0x5   :  { %s1638_s14 = smov 0   ;;  %s1640_s15 = smov 0  }
   0x6 LB: > { %s1655_s16 = sadd.s32 4294967295, %s1602_s15   ;;  %s1376_s17 = sadd.s32 4294967294, %s1602_s15   ;;  %s1602_s15 = sphi %s1640_s15, %s2285_s15   ;;  %s1598_s14 = sphi %s1638_s14, %s2284_s14   ;;  %s1594_s13 = sphi %s1636_s13, %s2283_s13   ;;  %s1590_s12 = sphi %s1634_s12, %s2282_s12  }
   0x7   : > { %p40_p0 = scmp.ne.s32.totalorder %s1594_s13, %s1590_s12  ;;  %p2257_p1 = scmp.eq.s32.totalorder %s1655_s16, 0 }
   0x8   : > { %p112_p3 = scmp.eq.s32.totalorder %s1376_s17, 1  ;;  %p1377_p5 = scmp.ge.s32.totalorder %s1602_s15, 1 }
   0x9   : > { %p1664_p4 = por %p2257_p1, %p40_p0  ;;  %p119_p7 = scmp.lt.s32.totalorder %s1602_s15, 3 }
   0xa   : > { %p1669_p6 = por %p112_p3, %p40_p0  ;;  %s1604_s21 = smov [#allocation5]  }
   0xb   : > { %s2264_s18 = scalar_select %p1664_p4, 1, 0 }
   0xc   : > { %s2265_s19 = scalar_select %p1669_p6, 1, 0 }
   0xd   : > { %p1674_p8 = pnand %p1377_p5, %p119_p7  ;;  %s131_s22 = sshll.u32 %s1604_s21, 4  ;;  %s132_s22 = int_to_ptr.vmem [resolvable:$true] %s131_s22 }
   0xe   : > { %s1688_s24 = sadd.s32 1, %s1602_s15   ;;  %s27_s25 = sadd.s32 1, %s1598_s14 }
   0xf   : > { %s2266_s20 = scalar_select %p1674_p8, 1, 0 }
  0x10   : > { %p1420_p9 = pneg %p1674_p8  ;;  %s24_s26 = ssub.s32 %s1602_s15, %s1688_s24 }
  0x11   : > { %s1491_s27 = scalar_lea.vmem %s132_s22, 512  ;;  %p1499_p5 = scmp.lt.s32.totalorder %s132_s22, %s132_s22 }
  0x12   : > { %p1683_p11 = pnand %p1420_p9, %p2257_p1  ;;  %p1492_p13 = scmp.ne.s32.totalorder %s132_s22, %s1491_s27 }
  0x13   : > { %p1500_p7 = scmp.lt.s32.totalorder %s1491_s27, %s1491_s27 }
  0x14   : > { %p1482_p12 = pneg %p1683_p11 }
  0x15   : > { %p1501_p10 = por %p1500_p7, %p1499_p5 }
  0x16   : > { %p1494_p0 = pnand %p1492_p13, %p1482_p12 }
  0x18   : > { %p1495_p3 = pneg %p1494_p0 }
  0x1a   : > { %p1502_p2 = pnand %p1501_p10, %p1495_p3 }
  0x1c   : > { %1505 = shalt.err (!%p1502_p2)
}
  0x1d   : > { %s1605_s28 = smov 128   ;;  %s1606_s29 = smov 8  }
  0x1e   : > { %1423 = dma.hbm_to_vmem [thread:$0]  (!%p1683_p11), %s2254_s1, 512, %s132_s22, [#allocation6], %s1605_s28, %s1605_s28, %s1606_s29  }
  0x1f   : > { %p25_p9 = scmp.eq.s32.totalorder %s24_s26, 0  ;;  %p34_p12 = scmp.ne.s32.totalorder %s1598_s14, %s1594_s13 }
  0x20   : > { %p35_p10 = scmp.eq.s32.totalorder %s1602_s15, 0  ;;  %p1433_p2 = scmp.lt.s32.totalorder %s1602_s15, 2 }
  0x21   : > { %s1705_s5 = scalar_select %p25_p9, %s1598_s14, %s27_s25  }
  0x22   : > { %p36_p13 = por %p35_p10, %p34_p12  ;;  %p2268_p0 = scmp.eq.s32.totalorder %s1655_s16, 1 }
  0x23   : > { %s148_s7 = sand.u32 1, %s1598_s14   ;;  %s1395_s8 = sshll.u32 %s1602_s15, 13 }
  0x24   : > { %p1709_p3 = por %p2268_p0, %p34_p12  ;;  %s1380_s9 = sshll.u32 %s148_s7, 9 }
  0x25   : > { %s1718_s17 = scalar_lea.hbm %s2253_s0, %s1395_s8  ;;  %s152_s21 = scalar_lea.vmem [#allocation2], %s1380_s9 }
  0x26   : > { %s2269_s6 = scalar_select %p1709_p3, 1, 0 }
  0x27   : > { %s160_s22 = sshll.u32 %s152_s21, 4  ;;  %p1720_p11 = pnand %p1433_p2, %p36_p13  ;;  %s1724_s22 = int_to_ptr.vmem [resolvable:$true] %s160_s22 }
  0x28   : > { %s1726_s25 = scalar_lea.sflag [#allocation3], %s148_s7  ;;  %s1506_s26 = scalar_lea.hbm %s1718_s17, 8192 }
  0x29   : > { %p1507_p5 = scmp.ne.s32.totalorder %s1718_s17, %s1506_s26  ;;  %p1508_p7 = pneg %p1720_p11 }
  0x2a   : > { %s1511_s29 = scalar_lea.hbm %s2253_s0, 16384  ;;  %p1512_p10 = scmp.lt.s32.totalorder %s1718_s17, %s2253_s0 }
  0x2b   : > { %p1509_p9 = pnand %p1508_p7, %p1507_p5  ;;  %p1513_p2 = scmp.lt.s32.totalorder %s1511_s29, %s1506_s26 }
  0x2d   : > { %p1510_p12 = pneg %p1509_p9  ;;  %p1514_p13 = por %p1513_p2, %p1512_p10 }
  0x2f   : > { %p1515_p0 = pnand %p1514_p13, %p1510_p12 }
  0x31   : > { %1518 = shalt.err (!%p1515_p0)
}
  0x32   : > { %s1519_s7 = scalar_lea.vmem %s1724_s22, 8192  ;;  %s1607_s8 = smov [#allocation2]  }
  0x33   : > { %p1520_p1 = scmp.ne.s32.totalorder %s1724_s22, %s1519_s7  ;;  %s1524_s9 = sshll.u32 %s1607_s8, 4  ;;  %s1525_s9 = int_to_ptr.vmem [resolvable:$false] %s1524_s9 }
  0x34   : > { %s1526_s10 = scalar_lea.vmem %s1525_s9, 16384  ;;  %p1527_p9 = scmp.lt.s32.totalorder %s1724_s22, %s1525_s9 }
  0x35   : > { %p1522_p6 = pnand %p1520_p1, %p1508_p7  ;;  %p1528_p3 = scmp.lt.s32.totalorder %s1526_s10, %s1519_s7 }
  0x37   : > { %p1523_p5 = pneg %p1522_p6  ;;  %p1529_p4 = por %p1528_p3, %p1527_p9 }
  0x39   : > { %p1530_p8 = pnand %p1529_p4, %p1523_p5 }
  0x3b   : > { %1533 = shalt.err (!%p1530_p8)
}
  0x3c   : > { %s1608_s11 = smov 256   ;;  %s1609_s21 = smov 16  }
  0x3d   : > { %1427 = dma.hbm_to_vmem [thread:$0]  (!%p1720_p11), %s1718_s17, 8192, %s1724_s22, %s1726_s25, %s1608_s11, %s1608_s11, %s1609_s21  }
  0x3e   : > { %p2271_p1 = scmp.ne.s32.totalorder %s2266_s20, 0 }
  0x40   : > { %172 = sbr.rel (%p2271_p1) target bundleno = 853 (0x355), region = 32 }
  0x45   : > { %s1750_s26 = sand.u32 1, %s1594_s13   ;;  %p2272_p4 = scmp.ne.s32.totalorder %s2264_s18, 0 }
  0x46   : > { %s1385_s27 = sshll.u32 %s1750_s26, 9  ;;  %s175_s28 = scalar_lea.sflag [#allocation3], %s1750_s26 }
  0x47   : > { %s1754_s29 = scalar_lea.vmem [#allocation2], %s1385_s27 }
  0x48   : > { %1577 = dma.done.wait (%p2272_p4), %s175_s28, 8192  }
  0x49   : > { %1579 = vsyncadd (%p2272_p4), %s175_s28, 4294959104  ;;  %p2273_p6 = scmp.eq.s32.totalorder %s1655_s16, 0 }
  0x4b   : > { %1581 = dma.done.wait (%p2273_p6), [#allocation6], 512   ;;  %p2274_p8 = pmov %p2273_p6 }
  0x4c   : > { %v210_v0 = vld [vmem:[%s1754_s29 + $0x40] sm:$0xff]  ;;  %v242_v1 = vld [vmem:[%s1754_s29 + $0x48] sm:$0xff]  ;;  %v211_v5 = vld [vmem:[%s1754_s29 + $0x50] sm:$0xff]  ;;  %vm473_vm0 = vcmask 130112   ;;  %vm480_vm1 = vcmask 195712   ;;  %vm487_vm2 = vcmask 261312  }
  0x4d   : > { %1583 = vsyncadd (%p2274_p8), [#allocation6], 4294966784  ;;  %v206_v2 = vld [vmem:[%s1754_s29] sm:$0xff]  ;;  %v274_v3 = vadd.f32 %v242_v1, %v210_v0  ;;  %v238_v4 = vld [vmem:[%s1754_s29 + $0x8] sm:$0xff]  ;;  %vm622_vm3 = vcmask 1041409   ;;  %vm624_vm4 = vcmask 1042434  }
  0x4e   : > { %v243_v6 = vld [vmem:[%s1754_s29 + $0x58] sm:$0xff]  ;;  %v270_v7 = vadd.f32 %v238_v4, %v206_v2  ;;  %v207_v8 = vld [vmem:[%s1754_s29 + $0x10] sm:$0xff]  ;;  %v212_v12 = vld [vmem:[%s1754_s29 + $0x60] sm:$0xff]  ;;  %vm626_vm5 = vcmask 1043459   ;;  %vm628_vm6 = vcmask 1044484   ;;  %vm630_vm7 = vcmask 1045509  }
  0x4f   : > { %v239_v9 = vld [vmem:[%s1754_s29 + $0x18] sm:$0xff]  ;;  %310 = vadd.xlane.f32.xlu1 %v274_v3  ;;  %v275_v10 = vadd.f32 %v243_v6, %v211_v5  ;;  %v244_v13 = vld [vmem:[%s1754_s29 + $0x68] sm:$0xff]  ;;  %v208_v14 = vld [vmem:[%s1754_s29 + $0x20] sm:$0xff]  ;;  %vm632_vm8 = vcmask 1046534   ;;  %vm634_vm9 = vcmask 1047559   ;;  %vm637_vm10 = vcmask 261120  }
  0x50   : > { %302 = vadd.xlane.f32.xlu0 %v270_v7  ;;  %v271_v11 = vadd.f32 %v239_v9, %v207_v8  ;;  %v240_v15 = vld [vmem:[%s1754_s29 + $0x28] sm:$0xff]  ;;  %v276_v16 = vadd.f32 %v244_v13, %v212_v12  ;;  %v215_v18 = vld [vmem:[%s1754_s29 + $0x90] sm:$0xff]  ;;  %v247_v19 = vld [vmem:[%s1754_s29 + $0x98] sm:$0xff]  ;;  %vm1612_vm11 = vmmov 0   ;;  %s1387_s18 = sshll.u32 %s1750_s26, 3  ;;  %s1391_s22 = sshll.u32 %s1655_s16, 7 }
  0x51   : > { %v272_v17 = vadd.f32 %v240_v15, %v208_v14  ;;  %v214_v20 = vld [vmem:[%s1754_s29 + $0x80] sm:$0xff]  ;;  %v246_v21 = vld [vmem:[%s1754_s29 + $0x88] sm:$0xff]  ;;  %v279_v22 = vadd.f32 %v247_v19, %v215_v18  ;;  %v213_v24 = vld [vmem:[%s1754_s29 + $0x70] sm:$0xff]  ;;  %s204_s23 = scalar_lea.vmem [#allocation7], %s1387_s18  ;;  %s2216_s7 = scalar_lea.hbm %s2256_s3, %s1391_s22 }
  0x52   : > { %v278_v23 = vadd.f32 %v246_v21, %v214_v20  ;;  %v245_v25 = vld [vmem:[%s1754_s29 + $0x78] sm:$0xff]  ;;  %v209_v26 = vld [vmem:[%s1754_s29 + $0x30] sm:$0xff]  ;;  %v218_v30 = vld [vmem:[%s1754_s29 + $0xc0] sm:$0xff]  ;;  %s1296_s25 = sshll.u32 %s204_s23, 4  ;;  %s1283_s8 = scalar_lea.sflag [#allocation4], %s1750_s26  ;;  %s1297_s25 = int_to_ptr.vmem [resolvable:$true] %s1296_s25 }
  0x53   : > { %312 = vadd.xlane.f32.xlu1 %v275_v10  ;;  %v241_v27 = vld [vmem:[%s1754_s29 + $0x38] sm:$0xff]  ;;  %v277_v28 = vadd.f32 %v245_v25, %v213_v24  ;;  %v250_v31 = vld [vmem:[%s1754_s29 + $0xc8] sm:$0xff]  ;;  %v216_v32 = vld [vmem:[%s1754_s29 + $0xa0] sm:$0xff]  ;;  %s1534_s9 = scalar_lea.vmem %s1297_s25, 128  ;;  %p2279_p11 = scmp.ne.s32.totalorder %s2269_s6, 0 }
  0x54   : > { %304 = vadd.xlane.f32.xlu0 %v271_v11  ;;  %v273_v29 = vadd.f32 %v241_v27, %v209_v26  ;;  %v248_v33 = vld [vmem:[%s1754_s29 + $0xa8] sm:$0xff]  ;;  %v282_v34 = vadd.f32 %v250_v31, %v218_v30  ;;  %v217_v36 = vld [vmem:[%s1754_s29 + $0xb0] sm:$0xff]  ;;  %v249_v37 = vld [vmem:[%s1754_s29 + $0xb8] sm:$0xff]  ;;  %p1535_p3 = scmp.ne.s32.totalorder %s1297_s25, %s1534_s9  ;;  %s1613_s10 = smov [#allocation7]  }
  0x55   : > { %v280_v35 = vadd.f32 %v248_v33, %v216_v32  ;;  %v219_v38 = vld [vmem:[%s1754_s29 + $0xd0] sm:$0xff]  ;;  %v251_v39 = vld [vmem:[%s1754_s29 + $0xd8] sm:$0xff]  ;;  %v281_v40 = vadd.f32 %v249_v37, %v217_v36  ;;  %v222_v42 = vld [vmem:[%s1754_s29 + $0x100] sm:$0xff]  ;;  %s1538_s16 = sshll.u32 %s1613_s10, 4  ;;  %s1539_s16 = int_to_ptr.vmem [resolvable:$false] %s1538_s16 }
  0x56   : > { %v283_v41 = vadd.f32 %v251_v39, %v219_v38  ;;  %v254_v43 = vld [vmem:[%s1754_s29 + $0x108] sm:$0xff]  ;;  %v220_v44 = vld [vmem:[%s1754_s29 + $0xe0] sm:$0xff]  ;;  %v221_v48 = vld [vmem:[%s1754_s29 + $0xf0] sm:$0xff]  ;;  %v462_v38 = vlaneseq  ;;  %p1536_p7 = pnand %p1535_p3, %p2279_p11  ;;  %s1540_s11 = scalar_lea.vmem %s1539_s16, 256 }
  0x57   : > { %314 = vadd.xlane.f32.xlu1 %v276_v16  ;;  %v252_v45 = vld [vmem:[%s1754_s29 + $0xe8] sm:$0xff]  ;;  %v286_v46 = vadd.f32 %v254_v43, %v222_v42  ;;  %v253_v49 = vld [vmem:[%s1754_s29 + $0xf8] sm:$0xff]  ;;  %v223_v50 = vld [vmem:[%s1754_s29 + $0x110] sm:$0xff]  ;;  %p1541_p10 = scmp.lt.s32.totalorder %s1297_s25, %s1539_s16  ;;  %p1542_p2 = scmp.lt.s32.totalorder %s1540_s11, %s1534_s9 }
  0x58   : > { %306 = vadd.xlane.f32.xlu0 %v272_v17  ;;  %v284_v47 = vadd.f32 %v252_v45, %v220_v44  ;;  %v255_v51 = vld [vmem:[%s1754_s29 + $0x118] sm:$0xff]  ;;  %v285_v52 = vadd.f32 %v253_v49, %v221_v48  ;;  %v226_v54 = vld [vmem:[%s1754_s29 + $0x140] sm:$0xff]  ;;  %v258_v55 = vld [vmem:[%s1754_s29 + $0x148] sm:$0xff]  ;;  %v1828_v44 = vshrl.u32 %v462_v38, 7  ;;  %p1537_p12 = pneg %p1536_p7 }
  0x59   : > { %v287_v53 = vadd.f32 %v255_v51, %v223_v50  ;;  %v224_v56 = vld [vmem:[%s1754_s29 + $0x120] sm:$0xff]  ;;  %v256_v57 = vld [vmem:[%s1754_s29 + $0x128] sm:$0xff]  ;;  %v290_v58 = vadd.f32 %v258_v55, %v226_v54  ;;  %v225_v60 = vld [vmem:[%s1754_s29 + $0x130] sm:$0xff]  ;;  %p1543_p13 = por %p1542_p2, %p1541_p10 }
  0x5a   : > { %v288_v59 = vadd.f32 %v256_v57, %v224_v56  ;;  %v257_v61 = vld [vmem:[%s1754_s29 + $0x138] sm:$0xff]  ;;  %v227_v62 = vld [vmem:[%s1754_s29 + $0x150] sm:$0xff]  ;;  %v230_v2 = vld [vmem:[%s1754_s29 + $0x180] sm:$0xff] }
  0x5b   : > { %320 = vadd.xlane.f32.xlu1 %v279_v22  ;;  %v259_v63 = vld [vmem:[%s1754_s29 + $0x158] sm:$0xff]  ;;  %v289_v0 = vadd.f32 %v257_v61, %v225_v60  ;;  %v262_v3 = vld [vmem:[%s1754_s29 + $0x188] sm:$0xff]  ;;  %v228_v4 = vld [vmem:[%s1754_s29 + $0x160] sm:$0xff]  ;;  %p1544_p0 = pnand %p1543_p13, %p1537_p12 }
  0x5c   : > { %318 = vadd.xlane.f32.xlu0 %v278_v23  ;;  %v291_v1 = vadd.f32 %v259_v63, %v227_v62  ;;  %v260_v5 = vld [vmem:[%s1754_s29 + $0x168] sm:$0xff]  ;;  %v294_v6 = vadd.f32 %v262_v3, %v230_v2  ;;  %v229_v8 = vld [vmem:[%s1754_s29 + $0x170] sm:$0xff]  ;;  %v261_v9 = vld [vmem:[%s1754_s29 + $0x178] sm:$0xff] }
  0x5d   : > { %v292_v7 = vadd.f32 %v260_v5, %v228_v4  ;;  %v231_v10 = vld [vmem:[%s1754_s29 + $0x190] sm:$0xff]  ;;  %v263_v11 = vld [vmem:[%s1754_s29 + $0x198] sm:$0xff]  ;;  %v293_v12 = vadd.f32 %v261_v9, %v229_v8  ;;  %v234_v14 = vld [vmem:[%s1754_s29 + $0x1c0] sm:$0xff] }
  0x5e   : > { %v295_v13 = vadd.f32 %v263_v11, %v231_v10  ;;  %v266_v15 = vld [vmem:[%s1754_s29 + $0x1c8] sm:$0xff]  ;;  %v232_v16 = vld [vmem:[%s1754_s29 + $0x1a0] sm:$0xff]  ;;  %v233_v20 = vld [vmem:[%s1754_s29 + $0x1b0] sm:$0xff] }
  0x5f   : > { %316 = vadd.xlane.f32.xlu1 %v277_v28  ;;  %v264_v17 = vld [vmem:[%s1754_s29 + $0x1a8] sm:$0xff]  ;;  %v298_v18 = vadd.f32 %v266_v15, %v234_v14  ;;  %v265_v21 = vld [vmem:[%s1754_s29 + $0x1b8] sm:$0xff]  ;;  %v235_v22 = vld [vmem:[%s1754_s29 + $0x1d0] sm:$0xff] }
  0x60   : > { %308 = vadd.xlane.f32.xlu0 %v273_v29  ;;  %v296_v19 = vadd.f32 %v264_v17, %v232_v16  ;;  %v267_v23 = vld [vmem:[%s1754_s29 + $0x1d8] sm:$0xff]  ;;  %v297_v24 = vadd.f32 %v265_v21, %v233_v20  ;;  %v237_v26 = vld [vmem:[%s1754_s29 + $0x1f0] sm:$0xff]  ;;  %v236_v28 = vld [vmem:[%s1754_s29 + $0x1e0] sm:$0xff] }
  0x61   : > { %v299_v25 = vadd.f32 %v267_v23, %v235_v22  ;;  %v269_v27 = vld [vmem:[%s1754_s29 + $0x1f8] sm:$0xff]  ;;  %v268_v29 = vld [vmem:[%s1754_s29 + $0x1e8] sm:$0xff] }
  0x62   : > { %v301_v30 = vadd.f32 %v269_v27, %v237_v26  ;;  %v300_v31 = vadd.f32 %v268_v29, %v236_v28 }
  0x63   : > { %326 = vadd.xlane.f32.xlu1 %v282_v34 }
  0x64   : > { %322 = vadd.xlane.f32.xlu0 %v280_v35 }
  0x67   : > { %324 = vadd.xlane.f32.xlu1 %v281_v40 }
  0x68   : > { %328 = vadd.xlane.f32.xlu0 %v283_v41  ;;  %v463_v41 = vand.u32 127, %v462_v38 }
  0x6a   : > { %v468_v42 = vadd.s32 4294967288, %v463_v41  ;;  %v475_v48 = vadd.s32 4294967280, %v463_v41  ;;  %v482_v50 = vadd.s32 4294967272, %v463_v41  ;;  %v1842_v54 = vsub.s32 %v463_v41, %v1828_v44 }
  0x6b   : > { %334 = vadd.xlane.f32.xlu1 %v286_v46 }
  0x6c   : > { %330 = vadd.xlane.f32.xlu0 %v284_v47  ;;  %v1855_v62 = vsub.s32 %v482_v50, %v1828_v44 }
  0x6f   : > { %332 = vadd.xlane.f32.xlu1 %v285_v52  ;;  %v1839_v52 = vsub.s32 %v468_v42, %v1828_v44 }
  0x70   : > { %336 = vadd.xlane.f32.xlu0 %v287_v53 }
  0x71   : > { %2275 = vst [vmem:[#allocation11_spill] sm:$0xff] %v1839_v52 }
  0x73   : > { %342 = vadd.xlane.f32.xlu1 %v290_v58  ;;  %v1847_v58 = vsub.s32 %v475_v48, %v1828_v44 }
  0x74   : > { %338 = vadd.xlane.f32.xlu0 %v288_v59 }
  0x77   : > { %340 = vadd.xlane.f32.xlu1 %v289_v0 }
  0x78   : > { %344 = vadd.xlane.f32.xlu0 %v291_v1 }
  0x7b   : > { %350 = vadd.xlane.f32.xlu1 %v294_v6 }
  0x7c   : > { %346 = vadd.xlane.f32.xlu0 %v292_v7 }
  0x7f   : > { %348 = vadd.xlane.f32.xlu1 %v293_v12 }
  0x80   : > { %352 = vadd.xlane.f32.xlu0 %v295_v13 }
  0x83   : > { %358 = vadd.xlane.f32.xlu1 %v298_v18 }
  0x84   : > { %354 = vadd.xlane.f32.xlu0 %v296_v19 }
  0x87   : > { %356 = vadd.xlane.f32.xlu1 %v297_v24 }
  0x88   : > { %360 = vadd.xlane.f32.xlu0 %v299_v25 }
  0x8b   : > { %364 = vadd.xlane.f32.xlu1 %v301_v30 }
  0x8c   : > { %362 = vadd.xlane.f32.xlu0 %v300_v31 }
  0xd8   : > { %v311_v32 = vpop.xlane.xlu1 %310 }
  0xd9   : > { %v303_v33 = vpop.xlane.xlu0 %302  ;;  %v1834_v49 = vmul.f32 0.00390625, %v311_v32 }
  0xda   : > { %v1836_v51 = vmul.f32 0.00390625, %v303_v33 }
  0xdb   : > { %v402_v60 = vand.u32 2147483647, %v1834_v49  ;;  %v695_v8 = vrot.slane %v1834_v49, %v1842_v54 }
  0xdc   : > { %v313_v34 = vpop.xlane.xlu1 %312  ;;  %v398_v63 = vand.u32 2147483647, %v1836_v51  ;;  %v676_v13 = vrot.slane %v1836_v51, %v1842_v54 }
  0xdd   : > { %v305_v35 = vpop.xlane.xlu0 %304  ;;  %v1830_v45 = vmul.f32 0.00390625, %v313_v34  ;;  %v492_v12 = vrot.slane %v402_v60, %v1842_v54 }
  0xde   : > { %v1832_v47 = vmul.f32 0.00390625, %v305_v35  ;;  %v467_v16 = vrot.slane %v398_v63, %v1842_v54 }
  0xdf   : > { %v403_v55 = vand.u32 2147483647, %v1830_v45  ;;  %v699_v0 = vrot.slane %v1830_v45, %v1839_v52 }
  0xe0   : > { %v315_v36 = vpop.xlane.xlu1 %314  ;;  %v399_v57 = vand.u32 2147483647, %v1832_v47  ;;  %v680_v5 = vrot.slane %v1832_v47, %v1839_v52 }
  0xe1   : > { %v307_v37 = vpop.xlane.xlu0 %306  ;;  %v1849_v59 = vmul.f32 0.00390625, %v315_v36  ;;  %v496_v4 = vrot.slane %v403_v55, %v1839_v52  ;;  %v700_v17 = vsel %vm473_vm0, %v699_v0, %v695_v8 }
  0xe2   : > { %v1852_v61 = vmul.f32 0.00390625, %v307_v37  ;;  %v472_v9 = vrot.slane %v399_v57, %v1839_v52  ;;  %v681_v22 = vsel %vm473_vm0, %v680_v5, %v676_v13 }
  0xe3   : > { %v404_v10 = vand.u32 2147483647, %v1849_v59  ;;  %v704_v14 = vrot.slane %v1849_v59, %v1847_v58  ;;  %v497_v21 = vsel %vm473_vm0, %v496_v4, %v492_v12 }
  0xe4   : > { %v321_v39 = vpop.xlane.xlu1 %320  ;;  %v400_v15 = vand.u32 2147483647, %v1852_v61  ;;  %v474_v26 = vsel %vm473_vm0, %v472_v9, %v467_v16  ;;  %v685_v28 = vrot.slane %v1852_v61, %v1847_v58 }
  0xe5   : > { %v319_v40 = vpop.xlane.xlu0 %318  ;;  %v1860_v1 = vmul.f32 0.00390625, %v321_v39  ;;  %v501_v27 = vrot.slane %v404_v10, %v1847_v58  ;;  %v705_v30 = vsel %vm480_vm1, %v704_v14, %v700_v17 }
  0xe6   : > { %v1862_v2 = vmul.f32 0.00390625, %v319_v40  ;;  %v479_v31 = vrot.slane %v400_v15, %v1847_v58 }
  0xe7   : > { %v407_v18 = vand.u32 2147483647, %v1860_v1  ;;  %v718_v32 = vrot.slane %v1860_v1, %v1839_v52 }
  0xe8   : > { %v317_v43 = vpop.xlane.xlu1 %316  ;;  %v406_v19 = vand.u32 2147483647, %v1862_v2  ;;  %v714_v36 = vrot.slane %v1862_v2, %v1842_v54  ;;  %v481_v57 = vsel %vm480_vm1, %v479_v31, %v474_v26 }
  0xe9   : > { %v309_v46 = vpop.xlane.xlu0 %308  ;;  %v1867_v6 = vmul.f32 0.00390625, %v317_v43  ;;  %v515_v34 = vrot.slane %v407_v18, %v1839_v52 }
  0xea   : > { %v1873_v11 = vmul.f32 0.00390625, %v309_v46  ;;  %v511_v35 = vrot.slane %v406_v19, %v1842_v54  ;;  %v686_v46 = vsel %vm480_vm1, %v685_v28, %v681_v22  ;;  %v719_v0 = vsel %vm473_vm0, %v718_v32, %v714_v36 }
  0xeb   : > { %v405_v23 = vand.u32 2147483647, %v1867_v6  ;;  %v709_v37 = vrot.slane %v1867_v6, %v1855_v62 }
  0xec   : > { %v327_v53 = vpop.xlane.xlu1 %326  ;;  %v401_v29 = vand.u32 2147483647, %v1873_v11  ;;  %v690_v40 = vrot.slane %v1873_v11, %v1855_v62  ;;  %v516_v63 = vsel %vm473_vm0, %v515_v34, %v511_v35 }
  0xed   : > { %v323_v56 = vpop.xlane.xlu0 %322  ;;  %v506_v39 = vrot.slane %v405_v23, %v1855_v62  ;;  %v1910_v41 = vmul.f32 0.00390625, %v327_v53 }
  0xee   : > { %v1888_v24 = vmul.f32 0.00390625, %v323_v56  ;;  %v486_v48 = vrot.slane %v401_v29, %v1855_v62  ;;  %v502_v56 = vsel %vm480_vm1, %v501_v27, %v497_v21  ;;  %v691_v8 = vsel %vm487_vm2, %v690_v40, %v686_v46 }
  0xef   : > { %v410_v9 = vand.u32 2147483647, %v1910_v41  ;;  %v733_v23 = vrot.slane %v1910_v41, %v1842_v54 }
  0xf0   : > { %v325_v3 = vpop.xlane.xlu1 %324  ;;  %v408_v42 = vand.u32 2147483647, %v1888_v24  ;;  %v723_v50 = vrot.slane %v1888_v24, %v1847_v58  ;;  %v488_v13 = vsel %vm487_vm2, %v486_v48, %v481_v57 }
  0xf1   : > { %v329_v7 = vpop.xlane.xlu0 %328  ;;  %v1899_v33 = vmul.f32 0.00390625, %v325_v3  ;;  %v710_v3 = vsel %vm487_vm2, %v709_v37, %v705_v30  ;;  %v530_v29 = vrot.slane %v410_v9, %v1842_v54 }
  0xf2   : > { %v1917_v55 = vmul.f32 0.00390625, %v329_v7  ;;  %v507_v7 = vsel %vm487_vm2, %v506_v39, %v502_v56  ;;  %v520_v10 = vrot.slane %v408_v42, %v1847_v58  ;;  %v724_v14 = vsel %vm480_vm1, %v723_v50, %v719_v0 }
  0xf3   : > { %v409_v60 = vand.u32 2147483647, %v1899_v33  ;;  %v728_v53 = vrot.slane %v1899_v33, %v1855_v62  ;;  %v825_v22 = vsel %vm622_vm3, %v710_v3, %v691_v8  ;;  %v623_v28 = vsel %vm622_vm3, %v507_v7, %v488_v13 }
  0xf4   : > { %v335_v20 = vpop.xlane.xlu1 %334  ;;  %v411_v15 = vand.u32 2147483647, %v1917_v55  ;;  %v737_v19 = vrot.slane %v1917_v55, %v1839_v52  ;;  %v521_v30 = vsel %vm480_vm1, %v520_v10, %v516_v63 }
  0xf5   : > { %v331_v25 = vpop.xlane.xlu0 %330  ;;  %v525_v17 = vrot.slane %v409_v60, %v1855_v62  ;;  %v729_v18 = vsel %vm487_vm2, %v728_v53, %v724_v14  ;;  %v1942_v21 = vmul.f32 0.00390625, %v335_v20 }
  0xf6   : > { %v1927_v4 = vmul.f32 0.00390625, %v331_v25  ;;  %v826_v32 = vsel %vm624_vm4, %v729_v18, %v825_v22  ;;  %v534_v34 = vrot.slane %v411_v15, %v1839_v52 }
  0xf7   : > { %v526_v37 = vsel %vm487_vm2, %v525_v17, %v521_v30  ;;  %v414_v39 = vand.u32 2147483647, %v1942_v21  ;;  %v752_v42 = vrot.slane %v1942_v21, %v1842_v54 }
  0xf8   : > { %v333_v38 = vpop.xlane.xlu1 %332  ;;  %v412_v25 = vand.u32 2147483647, %v1927_v4  ;;  %v742_v35 = vrot.slane %v1927_v4, %v1847_v58  ;;  %v535_v0 = vsel %vm473_vm0, %v534_v34, %v530_v29  ;;  %v625_v8 = vsel %vm624_vm4, %v526_v37, %v623_v28 }
  0xf9   : > { %v337_v43 = vpop.xlane.xlu0 %336  ;;  %v1936_v16 = vmul.f32 0.00390625, %v333_v38  ;;  %v738_v38 = vsel %vm473_vm0, %v737_v19, %v733_v23  ;;  %v549_v9 = vrot.slane %v414_v39, %v1842_v54 }
  0xfa   : > { %v1948_v26 = vmul.f32 0.00390625, %v337_v43  ;;  %v539_v43 = vrot.slane %v412_v25, %v1847_v58  ;;  %v743_v3 = vsel %vm480_vm1, %v742_v35, %v738_v38 }
  0xfb   : > { %v413_v36 = vand.u32 2147483647, %v1936_v16  ;;  %v747_v40 = vrot.slane %v1936_v16, %v1855_v62 }
  0xfc   : > { %v343_v5 = vpop.xlane.xlu1 %342  ;;  %v415_v46 = vand.u32 2147483647, %v1948_v26  ;;  %v756_v56 = vrot.slane %v1948_v26, %v1839_v52  ;;  %v540_v13 = vsel %vm480_vm1, %v539_v43, %v535_v0 }
  0xfd   : > { %v339_v12 = vpop.xlane.xlu0 %338  ;;  %v1973_v57 = vmul.f32 0.00390625, %v343_v5  ;;  %v544_v7 = vrot.slane %v413_v36, %v1855_v62  ;;  %v748_v10 = vsel %vm487_vm2, %v747_v40, %v743_v3 }
  0xfe   : > { %v1953_v31 = vmul.f32 0.00390625, %v339_v12  ;;  %v553_v14 = vrot.slane %v415_v46, %v1839_v52  ;;  %v757_v19 = vsel %vm473_vm0, %v756_v56, %v752_v42 }
  0xff   : > { %v418_v22 = vand.u32 2147483647, %v1973_v57  ;;  %v545_v28 = vsel %vm487_vm2, %v544_v7, %v540_v13  ;;  %v771_v34 = vrot.slane %v1973_v57, %v1842_v54 }
 0x100   : > { %v341_v27 = vpop.xlane.xlu1 %340  ;;  %v416_v60 = vand.u32 2147483647, %v1953_v31  ;;  %v761_v5 = vrot.slane %v1953_v31, %v1847_v58  ;;  %v554_v38 = vsel %vm473_vm0, %v553_v14, %v549_v9 }
 0x101   : > { %v345_v20 = vpop.xlane.xlu0 %344  ;;  %v1969_v48 = vmul.f32 0.00390625, %v341_v27 }
 0x102   : > { %v1976_v53 = vmul.f32 0.00390625, %v345_v20  ;;  %v558_v23 = vrot.slane %v416_v60, %v1847_v58  ;;  %v827_v20 = vsel %vm626_vm5, %v748_v10, %v826_v32  ;;  %v762_v35 = vsel %vm480_vm1, %v761_v5, %v757_v19 }
 0x103   : > { %v417_v15 = vand.u32 2147483647, %v1969_v48  ;;  %v766_v17 = vrot.slane %v1969_v48, %v1855_v62  ;;  %v568_v32 = vrot.slane %v418_v22, %v1842_v54  ;;  %v2018_v60 = vsel %vm626_vm5, %v545_v28, %v625_v8 }
 0x104   : > { %v351_v50 = vpop.xlane.xlu1 %350  ;;  %v419_v25 = vand.u32 2147483647, %v1976_v53  ;;  %v775_v36 = vrot.slane %v1976_v53, %v1839_v52  ;;  %v559_v46 = vsel %vm480_vm1, %v558_v23, %v554_v38 }
 0x105   : > { %v347_v63 = vpop.xlane.xlu0 %346  ;;  %v1998_v29 = vmul.f32 0.00390625, %v351_v50  ;;  %v563_v39 = vrot.slane %v417_v15, %v1855_v62  ;;  %v767_v40 = vsel %vm487_vm2, %v766_v17, %v762_v35 }
 0x106   : > { %v1986_v12 = vmul.f32 0.00390625, %v347_v63  ;;  %v572_v50 = vrot.slane %v419_v25, %v1839_v52  ;;  %v776_v9 = vsel %vm473_vm0, %v775_v36, %v771_v34  ;;  %v828_v8 = vsel %vm628_vm6, %v767_v40, %v827_v20 }
 0x107   : > { %v422_v63 = vand.u32 2147483647, %v1998_v29  ;;  %v790_v13 = vrot.slane %v1998_v29, %v1842_v54 }
 0x108   : > { %v349_v18 = vpop.xlane.xlu1 %348  ;;  %v420_v37 = vand.u32 2147483647, %v1986_v12  ;;  %v780_v0 = vrot.slane %v1986_v12, %v1847_v58  ;;  %v573_v19 = vsel %vm473_vm0, %v572_v50, %v568_v32 }
 0x109   : > { %v353_v27 = vpop.xlane.xlu0 %352  ;;  %v2000_v30 = vmul.f32 0.00390625, %v349_v18  ;;  %v564_v18 = vsel %vm487_vm2, %v563_v39, %v559_v46  ;;  %v587_v28 = vrot.slane %v422_v63, %v1842_v54 }
 0x10a   : > { %v2012_v42 = vmul.f32 0.00390625, %v353_v27  ;;  %v577_v10 = vrot.slane %v420_v37, %v1847_v58  ;;  %v781_v20 = vsel %vm480_vm1, %v780_v0, %v776_v9 }
 0x10b   : > { %v421_v3 = vand.u32 2147483647, %v2000_v30  ;;  %v785_v5 = vrot.slane %v2000_v30, %v1855_v62 }
 0x10c   : > { %v359_v43 = vpop.xlane.xlu1 %358  ;;  %v423_v14 = vand.u32 2147483647, %v2012_v42  ;;  %v794_v15 = vrot.slane %v2012_v42, %v1839_v52  ;;  %v578_v39 = vsel %vm480_vm1, %v577_v10, %v573_v19 }
 0x10d   : > { %v355_v56 = vpop.xlane.xlu0 %354  ;;  %v2038_v22 = vmul.f32 0.00390625, %v359_v43  ;;  %v582_v34 = vrot.slane %v421_v3, %v1855_v62  ;;  %v786_v38 = vsel %vm487_vm2, %v785_v5, %v781_v20 }
 0x10e   : > { %v2024_v7 = vmul.f32 0.00390625, %v355_v56  ;;  %v591_v40 = vrot.slane %v423_v14, %v1839_v52  ;;  %v795_v43 = vsel %vm473_vm0, %v794_v15, %v790_v13 }
 0x10f   : > { %v426_v56 = vand.u32 2147483647, %v2038_v22  ;;  %v809_v10 = vrot.slane %v2038_v22, %v1842_v54  ;;  %v583_v14 = vsel %vm487_vm2, %v582_v34, %v578_v39 }
 0x110   : > { %v357_v17 = vpop.xlane.xlu1 %356  ;;  %v424_v23 = vand.u32 2147483647, %v2024_v7  ;;  %v799_v36 = vrot.slane %v2024_v7, %v1847_v58 }
 0x111   : > { %v2041_v25 = vmul.f32 0.00390625, %v357_v17  ;;  %v361_v27 = vpop.xlane.xlu0 %360  ;;  %v606_v34 = vrot.slane %v426_v56, %v1842_v54  ;;  %v629_v56 = vsel %vm628_vm6, %v564_v18, %v2018_v60 }
 0x112   : > { %v2046_v35 = vmul.f32 0.00390625, %v361_v27  ;;  %v596_v63 = vrot.slane %v424_v23, %v1847_v58  ;;  %v800_v23 = vsel %vm480_vm1, %v799_v36, %v795_v43  ;;  %v829_v43 = vsel %vm630_vm7, %v786_v38, %v828_v8 }
 0x113   : > { %v425_v37 = vand.u32 2147483647, %v2041_v25  ;;  %v804_v32 = vrot.slane %v2041_v25, %v1855_v62 }
 0x114   : > { %v427_v46 = vand.u32 2147483647, %v2046_v35  ;;  %v365_v50 = vpop.xlane.xlu1 %364  ;;  %v813_v0 = vrot.slane %v2046_v35, %v1839_v52 }
 0x115   : > { %v363_v3 = vpop.xlane.xlu0 %362  ;;  %v2062_v9 = vmul.f32 0.00390625, %v365_v50  ;;  %v601_v5 = vrot.slane %v425_v37, %v1855_v62  ;;  %v805_v37 = vsel %vm487_vm2, %v804_v32, %v800_v23  ;;  %v592_v50 = vsel %vm473_vm0, %v591_v40, %v587_v28 }
 0x116   : > { %v2067_v13 = vmul.f32 0.00390625, %v363_v3  ;;  %v610_v15 = vrot.slane %v427_v46, %v1839_v52  ;;  %v814_v46 = vsel %vm473_vm0, %v813_v0, %v809_v10  ;;  %v597_v3 = vsel %vm480_vm1, %v596_v63, %v592_v50 }
 0x117   : > { %v429_v17 = vand.u32 2147483647, %v2062_v9  ;;  %v823_v19 = vrot.slane %v2062_v9, %v1855_v62  ;;  %v830_v28 = vsel %vm632_vm8, %v805_v37, %v829_v43  ;;  %v631_v10 = vsel %vm630_vm7, %v583_v14, %v629_v56 }
 0x118   : > { %2276 = vst [vmem:[#allocation12_spill] sm:$0xff] %v2067_v13  ;;  %v428_v27 = vand.u32 2147483647, %v2067_v13  ;;  %v818_v20 = vrot.slane %v2067_v13, %v1847_v58  ;;  %v602_v13 = vsel %vm487_vm2, %v601_v5, %v597_v3  ;;  %v611_v40 = vsel %vm473_vm0, %v610_v15, %v606_v34 }
 0x119   : > { %v620_v39 = vrot.slane %v429_v17, %v1855_v62  ;;  %v633_v38 = vsel %vm632_vm8, %v602_v13, %v631_v10  ;;  %v853_v34 = vsub.s32 3, %v1828_v44  ;;  %v865_v10 = vsub.s32 6, %v1828_v44 }
 0x11a   : > { %v615_v52 = vrot.slane %v428_v27, %v1847_v58  ;;  %v819_v36 = vsel %vm480_vm1, %v818_v20, %v814_v46  ;;  %v845_v27 = vsub.s32 1, %v1828_v44 }
 0x11b   : > { %v824_v32 = vsel %vm487_vm2, %v823_v19, %v819_v36  ;;  %v1610_v19 = vmov 0   ;;  %v849_v36 = vsub.s32 2, %v1828_v44 }
 0x11c   : > { %v831_v0 = vsel %vm634_vm9, %v824_v32, %v830_v28  ;;  %v616_v63 = vsel %vm480_vm1, %v615_v52, %v611_v40  ;;  %1477 = vset.pattern.permute.xlu1 %v1610_v19  ;;  %1476 = vset.pattern.permute.xlu0 %v1610_v19  ;;  %v841_v52 = vsub.s32 0, %v1828_v44  ;;  %v912_v19 = vld [vmem:[#allocation5 + $0x8] sm:$0xff] }
 0x11d   : > { %v833_v17 = vsel %vm637_vm10, %v831_v0, -inf  ;;  %v621_v8 = vsel %vm487_vm2, %v620_v39, %v616_v63 }
 0x11e   : > { %834 = vmax.xlane.f32.xlu0 %v833_v17  ;;  %v635_v5 = vsel %vm634_vm9, %v621_v8, %v633_v38  ;;  %v869_v8 = vsub.s32 7, %v1828_v44 }
 0x11f   : > { %v638_v15 = vsel %vm637_vm10, %v635_v5, 0.0  ;;  %v914_v5 = vld [vmem:[#allocation5 + $0x18] sm:$0xff] }
 0x120   : > { %639 = vadd.xlane.f32.xlu1 %v638_v15  ;;  %v913_v15 = vld [vmem:[#allocation5 + $0x10] sm:$0xff] }
 0x1a7   : > { %v835_v60 = vpop.xlane.xlu0 %834 }
 0x1a8   : > { %1478 = vrcp.f32 %v835_v60 }
 0x1a9   : > { %v640_v14 = vpop.xlane.xlu1 %639 }
 0x1b5   : > { %v1479_v18 = vpop.eup %1478 }
 0x1b6   : > { %v837_v23 = vmul.f32 %v1479_v18, %v640_v14 }
 0x1b8   : > { %v842_v20 = vrot.slane %v837_v23, %v841_v52  ;;  %v846_v50 = vrot.slane %v837_v23, %v845_v27  ;;  %v854_v3 = vrot.slane %v837_v23, %v853_v34  ;;  %v850_v32 = vrot.slane %v837_v23, %v849_v36 }
 0x1b9   : > { %v866_v17 = vrot.slane %v837_v23, %v865_v10  ;;  %v870_v38 = vrot.slane %v837_v23, %v869_v8 }
 0x1ba   : > { %v880_v13 = vmul.f32 %v842_v20, %v1832_v47  ;;  %v879_v37 = vmul.f32 %v842_v20, %v1836_v51  ;;  %v883_v39 = vmul.f32 %v846_v50, %v1834_v49  ;;  %v886_v46 = vmul.f32 %v846_v50, %v1867_v6 }
 0x1bb   : > { %v884_v43 = vmul.f32 %v846_v50, %v1830_v45  ;;  %v891_v47 = vmul.f32 %v854_v3, %v1910_v41  ;;  %v857_v51 = vsub.s32 4, %v1828_v44  ;;  %v881_v28 = vmul.f32 %v842_v20, %v1852_v61 }
 0x1bc   : > { %958 = vperm.xlu1 %1477, %v880_v13   ;;  %955 = vperm.xlu0 %1476, %v879_v37   ;;  %v890_v49 = vmul.f32 %v850_v32, %v1899_v33  ;;  %v885_v6 = vmul.f32 %v846_v50, %v1849_v59  ;;  %v861_v45 = vsub.s32 5, %v1828_v44  ;;  %v887_v41 = vmul.f32 %v850_v32, %v1862_v2 }
 0x1bd   : > { %v858_v40 = vrot.slane %v837_v23, %v857_v51  ;;  %v894_v0 = vmul.f32 %v854_v3, %v1936_v16  ;;  %v888_v61 = vmul.f32 %v850_v32, %v1860_v1  ;;  %v882_v59 = vmul.f32 %v842_v20, %v1873_v11 }
 0x1be   : > { %v862_v63 = vrot.slane %v837_v23, %v861_v45  ;;  %v889_v2 = vmul.f32 %v850_v32, %v1888_v24  ;;  %v903_v16 = vmul.f32 %v866_v17, %v1998_v29  ;;  %v892_v1 = vmul.f32 %v854_v3, %v1917_v55 }
 0x1bf   : > { %v895_v56 = vmul.f32 %v858_v40, %v1942_v21  ;;  %v898_v21 = vmul.f32 %v858_v40, %v1969_v48  ;;  %v893_v11 = vmul.f32 %v854_v3, %v1927_v4  ;;  %v907_v48 = vmul.f32 %v870_v38, %v2038_v22 }
 0x1c0   : > { %967 = vperm.xlu1 %1477, %v883_v39   ;;  %976 = vperm.xlu0 %1476, %v886_v46   ;;  %v899_v33 = vmul.f32 %v862_v63, %v1973_v57  ;;  %v902_v57 = vmul.f32 %v862_v63, %v2000_v30  ;;  %v896_v24 = vmul.f32 %v858_v40, %v1948_v26 }
 0x1c1   : > { %v906_v29 = vmul.f32 %v866_v17, %v2041_v25  ;;  %v897_v44 = vmul.f32 %v858_v40, %v1953_v31  ;;  %v910_v55 = vmul.f32 %v870_v38, %v2062_v9  ;;  %v900_v30 = vmul.f32 %v862_v63, %v1976_v53  ;;  %v2277_v9 = vld [vmem:[#allocation12_spill] sm:$0xff] }
 0x1c2   : > { %v901_v4 = vmul.f32 %v862_v63, %v1986_v12  ;;  %v904_v22 = vmul.f32 %v866_v17, %v2012_v42  ;;  %v905_v26 = vmul.f32 %v866_v17, %v2024_v7  ;;  %v908_v25 = vmul.f32 %v870_v38, %v2046_v35  ;;  %v911_v12 = vld [vmem:[#allocation5] sm:$0xff] }
 0x1c3   : > { %v1611_v31 = vmov 0.0   ;;  %v909_v53 = vmul.f32 %v870_v38, %v2277_v9 }
 0x1c4   : > { %970 = vperm.xlu1 %1477, %v884_v43   ;;  %991 = vperm.xlu0 %1476, %v891_v47  }
 0x1c5   : > { %1401 = vmatprep.subr.mxu0 %v1611_v31  ;;  %1409 = vmatprep.mubr.msk.f32.mxu0 %vm1612_vm11, %v1611_v31 }
 0x1c6   : > { %1402 = vmatpush3.msra.mxu0 %v914_v5 }
 0x1c7   : > { %1403 = vmatprep.subr.mxu0 %v1611_v31 }
 0x1c8   : > { %961 = vperm.xlu1 %1477, %v881_v28   ;;  %988 = vperm.xlu0 %1476, %v890_v49  }
 0x1c9   : > { %1404 = vmatpush3.msra.mxu0 %v913_v15 }
 0x1ca   : > { %1405 = vmatprep.subr.mxu0 %v1611_v31 }
 0x1cb   : > { %1406 = vmatpush3.msra.mxu0 %v912_v19 }
 0x1cc   : > { %973 = vperm.xlu1 %1477, %v885_v6   ;;  %1003 = vperm.xlu0 %1476, %v895_v56   ;;  %v2278_v6 = vld [vmem:[#allocation11_spill] sm:$0xff] }
 0x1cd   : > { %1407 = vmatprep.subr.mxu0 %v1611_v31 }
 0x1ce   : > { %1408 = vmatpush3.msra.mxu0 %v911_v12 }
 0x1d0   : > { %979 = vperm.xlu1 %1477, %v887_v41   ;;  %1000 = vperm.xlu0 %1476, %v894_v0  }
 0x1d4   : > { %982 = vperm.xlu1 %1477, %v888_v61   ;;  %1015 = vperm.xlu0 %1476, %v899_v33  }
 0x1d8   : > { %964 = vperm.xlu1 %1477, %v882_v59   ;;  %1012 = vperm.xlu0 %1476, %v898_v21  }
 0x1dc   : > { %985 = vperm.xlu1 %1477, %v889_v2   ;;  %1027 = vperm.xlu0 %1476, %v903_v16  }
 0x1e0   : > { %994 = vperm.xlu1 %1477, %v892_v1   ;;  %1024 = vperm.xlu0 %1476, %v902_v57  }
 0x1e4   : > { %997 = vperm.xlu1 %1477, %v893_v11   ;;  %1039 = vperm.xlu0 %1476, %v907_v48  }
 0x1e8   : > { %1006 = vperm.xlu1 %1477, %v896_v24   ;;  %1036 = vperm.xlu0 %1476, %v906_v29  }
 0x1ec   : > { %1009 = vperm.xlu1 %1477, %v897_v44   ;;  %1048 = vperm.xlu0 %1476, %v910_v55  }
 0x1f0   : > { %1018 = vperm.xlu1 %1477, %v900_v30  }
 0x1f4   : > { %1021 = vperm.xlu1 %1477, %v901_v4  }
 0x1f8   : > { %1030 = vperm.xlu1 %1477, %v904_v22  }
 0x1fc   : > { %1033 = vperm.xlu1 %1477, %v905_v26  }
 0x200   : > { %1042 = vperm.xlu1 %1477, %v908_v25  }
 0x204   : > { %1045 = vperm.xlu1 %1477, %v909_v53  }
 0x237   : > { %v959_v42 = vpop.permute.xlu1 %958  ;;  %v956_v7 = vpop.permute.xlu0 %955 }
 0x238   : > { %v1057_v56 = vrot.slane %v959_v42, %v2278_v6  ;;  %v1053_v45 = vrot.slane %v956_v7, %v1842_v54 }
 0x23a   : > { %v1058_v59 = vsel %vm473_vm0, %v1057_v56, %v1053_v45 }
 0x23b   : > { %v968_v35 = vpop.permute.xlu1 %967  ;;  %v977_v60 = vpop.permute.xlu0 %976 }
 0x23c   : > { %v1072_v61 = vrot.slane %v968_v35, %v1842_v54  ;;  %v1086_v21 = vrot.slane %v977_v60, %v1855_v62 }
 0x23f   : > { %v971_v52 = vpop.permute.xlu1 %970  ;;  %v992_v18 = vpop.permute.xlu0 %991 }
 0x240   : > { %v1076_v41 = vrot.slane %v971_v52, %v2278_v6  ;;  %v1110_v17 = vrot.slane %v992_v18, %v1842_v54 }
 0x242   : > { %v1077_v16 = vsel %vm473_vm0, %v1076_v41, %v1072_v61 }
 0x243   : > { %v962_v14 = vpop.permute.xlu1 %961  ;;  %v2141_v27 = vpop.permute.xlu0 %988 }
 0x244   : > { %v1062_v0 = vrot.slane %v962_v14, %v1847_v58  ;;  %v1105_v8 = vrot.slane %v2141_v27, %v1855_v62 }
 0x246   : > { %v1063_v38 = vsel %vm480_vm1, %v1062_v0, %v1058_v59 }
 0x247   : > { %v974_v23 = vpop.permute.xlu1 %973  ;;  %v1004_v13 = vpop.permute.xlu0 %1003 }
 0x248   : > { %v1081_v33 = vrot.slane %v974_v23, %v1847_v58  ;;  %v1129_v22 = vrot.slane %v1004_v13, %v1842_v54 }
 0x24a   : > { %v1082_v29 = vsel %vm480_vm1, %v1081_v33, %v1077_v16 }
 0x24b   : > { %v980_v20 = vpop.permute.xlu1 %979  ;;  %v1001_v34 = vpop.permute.xlu0 %1000  ;;  %v1087_v12 = vsel %vm487_vm2, %v1086_v21, %v1082_v29 }
 0x24c   : > { %v1091_v11 = vrot.slane %v980_v20, %v1842_v54  ;;  %v1124_v60 = vrot.slane %v1001_v34, %v1855_v62 }
 0x24f   : > { %v983_v37 = vpop.permute.xlu1 %982  ;;  %v1016_v46 = vpop.permute.xlu0 %1015 }
 0x250   : > { %v1095_v2 = vrot.slane %v983_v37, %v2278_v6  ;;  %v1148_v9 = vrot.slane %v1016_v46, %v1842_v54 }
 0x252   : > { %v1096_v26 = vsel %vm473_vm0, %v1095_v2, %v1091_v11 }
 0x253   : > { %v965_v50 = vpop.permute.xlu1 %964  ;;  %v1013_v43 = vpop.permute.xlu0 %1012 }
 0x254   : > { %v1067_v44 = vrot.slane %v965_v50, %v1855_v62  ;;  %v1143_v27 = vrot.slane %v1013_v43, %v1855_v62 }
 0x256   : > { %v1068_v52 = vsel %vm487_vm2, %v1067_v44, %v1063_v38 }
 0x257   : > { %v986_v39 = vpop.permute.xlu1 %985  ;;  %v1028_v32 = vpop.permute.xlu0 %1027 }
 0x258   : > { %v1100_v1 = vrot.slane %v986_v39, %v1847_v58  ;;  %v1167_v42 = vrot.slane %v1028_v32, %v1842_v54 }
 0x25a   : > { %v1101_v53 = vsel %vm480_vm1, %v1100_v1, %v1096_v26 }
 0x25b   : > { %v995_v3 = vpop.permute.xlu1 %994  ;;  %v1025_v49 = vpop.permute.xlu0 %1024  ;;  %v1106_v20 = vsel %vm487_vm2, %v1105_v8, %v1101_v53 }
 0x25c   : > { %v1114_v57 = vrot.slane %v995_v3, %v2278_v6  ;;  %v1162_v50 = vrot.slane %v1025_v49, %v1855_v62  ;;  %v1202_v3 = vsel %vm622_vm3, %v1087_v12, %v1068_v52 }
 0x25d   : > { %v1203_v32 = vsel %vm624_vm4, %v1106_v20, %v1202_v3 }
 0x25e   : > { %v1115_v15 = vsel %vm473_vm0, %v1114_v57, %v1110_v17 }
 0x25f   : > { %v998_v36 = vpop.permute.xlu1 %997  ;;  %v1040_v63 = vpop.permute.xlu0 %1039 }
 0x260   : > { %v1119_v48 = vrot.slane %v998_v36, %v1847_v58 }
 0x262   : > { %v1120_v7 = vsel %vm480_vm1, %v1119_v48, %v1115_v15 }
 0x263   : > { %v1007_v47 = vpop.permute.xlu1 %1006  ;;  %v1037_v25 = vpop.permute.xlu0 %1036  ;;  %v1125_v39 = vsel %vm487_vm2, %v1124_v60, %v1120_v7 }
 0x264   : > { %v1133_v24 = vrot.slane %v1007_v47, %v2278_v6  ;;  %v1181_v36 = vrot.slane %v1037_v25, %v1855_v62 }
 0x266   : > { %v1134_v35 = vsel %vm473_vm0, %v1133_v24, %v1129_v22 }
 0x267   : > { %v1010_v51 = vpop.permute.xlu1 %1009  ;;  %v1049_v47 = vpop.permute.xlu0 %1048 }
 0x268   : > { %v1138_v55 = vrot.slane %v1010_v51, %v1847_v58  ;;  %v1186_v51 = vrot.slane %v1040_v63, %v1842_v54  ;;  %v1200_v41 = vrot.slane %v1049_v47, %v1855_v62 }
 0x26a   : > { %v1139_v18 = vsel %vm480_vm1, %v1138_v55, %v1134_v35 }
 0x26b   : > { %v1019_v28 = vpop.permute.xlu1 %1018  ;;  %v1144_v43 = vsel %vm487_vm2, %v1143_v27, %v1139_v18 }
 0x26c   : > { %v1152_v30 = vrot.slane %v1019_v28, %v2278_v6 }
 0x26e   : > { %v1153_v14 = vsel %vm473_vm0, %v1152_v30, %v1148_v9 }
 0x26f   : > { %v1022_v40 = vpop.permute.xlu1 %1021 }
 0x270   : > { %v1157_v5 = vrot.slane %v1022_v40, %v1847_v58  ;;  %v1204_v40 = vsel %vm626_vm5, %v1125_v39, %v1203_v32 }
 0x271   : > { %v1205_v45 = vsel %vm628_vm6, %v1144_v43, %v1204_v40 }
 0x272   : > { %v1158_v13 = vsel %vm480_vm1, %v1157_v5, %v1153_v14 }
 0x273   : > { %v1031_v10 = vpop.permute.xlu1 %1030  ;;  %v1163_v28 = vsel %vm487_vm2, %v1162_v50, %v1158_v13 }
 0x274   : > { %v1171_v31 = vrot.slane %v1031_v10, %v2278_v6  ;;  %v1206_v54 = vsel %vm630_vm7, %v1163_v28, %v1205_v45 }
 0x276   : > { %v1172_v37 = vsel %vm473_vm0, %v1171_v31, %v1167_v42 }
 0x277   : > { %v1034_v4 = vpop.permute.xlu1 %1033 }
 0x278   : > { %v1176_v19 = vrot.slane %v1034_v4, %v1847_v58 }
 0x27a   : > { %v1177_v34 = vsel %vm480_vm1, %v1176_v19, %v1172_v37 }
 0x27b   : > { %v1043_v23 = vpop.permute.xlu1 %1042 }
 0x27c   : > { %v1190_v46 = vrot.slane %v1043_v23, %v2278_v6  ;;  %v1182_v6 = vsel %vm487_vm2, %v1181_v36, %v1177_v34 }
 0x27d   : > { %v1207_v33 = vsel %vm632_vm8, %v1182_v6, %v1206_v54 }
 0x27e   : > { %v1191_v0 = vsel %vm473_vm0, %v1190_v46, %v1186_v51 }
 0x27f   : > { %v1046_v49 = vpop.permute.xlu1 %1045 }
 0x280   : > { %v1195_v56 = vrot.slane %v1046_v49, %v1847_v58  ;;  %v1388_v58 = vld [vmem:[%s2255_s2] ss:$0 sm:$0xff] }
 0x282   : > { %v1196_v61 = vsel %vm480_vm1, %v1195_v56, %v1191_v0 }
 0x283   : > { %v1201_v63 = vsel %vm487_vm2, %v1200_v41, %v1196_v61 }
 0x284   : > { %v1208_v10 = vsel %vm634_vm9, %v1201_v63, %v1207_v33 }
 0x285   : > { %1410 = vmatmul.mubr.msk.f32.vlgmr.msra.gmra.mxu0 %vm637_vm10, %v1208_v10 }
 0x345   : > { %v1277_v62 = vpop.f32.mrf.mxu0 }
 0x346   : > { %v1278_v59 = vadd.f32 %v1388_v58, %v1277_v62 }
 0x347   : > { %v1411_v21 = vpop.f32.mrf.mxu0 }
 0x348   : > { %1281 = vst [vmem:[%s204_s23] sm:$0xff] %v1278_v59 }
 0x349   : > { %1547 = shalt.err (!%p1544_p0)
}
 0x34a   : > { %s1548_s21 = scalar_lea.hbm %s2216_s7, 128  ;;  %s1552_s28 = scalar_lea.hbm %s2256_s3, 256 }
 0x34b   : > { %p1549_p5 = scmp.ne.s32.totalorder %s2216_s7, %s1548_s21  ;;  %p1553_p4 = scmp.lt.s32.totalorder %s2216_s7, %s2256_s3 }
 0x34c   : > { %p1554_p6 = scmp.lt.s32.totalorder %s1552_s28, %s1548_s21 }
 0x34d   : > { %p1550_p9 = pnand %p1549_p5, %p2279_p11 }
 0x34e   : > { %p1555_p8 = por %p1554_p6, %p1553_p4 }
 0x34f   : > { %p1551_p1 = pneg %p1550_p9 }
 0x351   : > { %p1556_p3 = pnand %p1555_p8, %p1551_p1 }
 0x353   : > { %1559 = shalt.err (!%p1556_p3)
}
 0x354   : > { %1418 = dma.vmem_to_hbm [thread:$0]  (%p2279_p11), %s1297_s25, 128, %s2216_s7, %s1283_s8  }
 0x355 PF: > { %s1308_s20 = sand.u32 1, %s1590_s12   ;;  %p2280_p7 = scmp.ne.s32.totalorder %s2265_s19, 0 }
 0x356   : > { %p2281_p12 = scmp.ge.s32.totalorder %s1602_s15, 2  ;;  %s1309_s17 = scalar_lea.sflag [#allocation4], %s1308_s20 }
 0x358   : > { %p1429_p10 = pnand %p2281_p12, %p2280_p7 }
 0x35a   : > { %p1430_p2 = pneg %p1429_p10 }
 0x35c   : > { %1585 = dma.done.wait (%p1430_p2), %s1309_s17, 128  }
 0x35d   : > { %1587 = vsyncadd (%p1430_p2), %s1309_s17, 4294967168  ;;  %p17_p13 = scmp.ge.s32.totalorder %s1688_s24, 4   ;;  %s2282_s12 = smov %s1594_s13 }
 0x35e   : > { %s2283_s13 = smov %s1598_s14  ;;  %s2284_s14 = smov %s1705_s5 }
 0x35f   : > { %s2285_s15 = smov %s1688_s24  ;;  %19 = sbr.rel (!%p17_p13) target bundleno = 6 (0x6), region = 81 }
 0x364   :  { %1314 = vsyncpa [#allocation3], 1 }
 0x365   :  { %1316 = vsyncpa [#allocation3 + $0x1], 1 }
 0x366   :  { %1317 = vsyncpa [#allocation6], 1 }
 0x367   :  { %1318 = vsyncpa [#allocation4], 1 }
 0x368   :  { %1320 = vsyncpa [#allocation4 + $0x1], 1 }

</bundles_post_ra>
